<compile_context>
chip_gen: v5e
topology: v5e:2x2
jax: 0.10.0
libtpu: 0.0.40
codegen_flags: <defaults>
</compile_context>

<pallas_src>
import math
import jax
import jax.numpy as jnp
from jax.experimental import pallas as pl
from jax.experimental.pallas import tpu as pltpu


def _round_up(x, m):
    return ((x + m - 1) // m) * m


def _hyper_mapping_kernel(z_ref, w0_ref, b0_ref, w12_ref, b12_ref,
                          w3_ref, b3_ref, out_ref):
    """Fused 4-layer MLP: (Linear + LeakyReLU(0.2)) x3 + Linear.

    z_ref:   (TB, Zp)     bf16  padded batch tile of z
    w0_ref:  (Zp, Hp)     bf16  layer-0 weight (in_dim, out_dim)
    b0_ref:  (1, Hp)      f32
    w12_ref: (2, Hp, Hp)  bf16  layers 1-2 weights
    b12_ref: (2, 1, Hp)   f32
    w3_ref:  (Hp, Op)     bf16  output-layer weight
    b3_ref:  (1, Op)      f32
    out_ref: (TB, Op)     f32   padded output tile
    """
    def leaky_relu(x):
        # max(x, 0.2*x) == leaky_relu(x, 0.2) for slope < 1 (mul+max on VPU).
        return jnp.maximum(x, 0.2 * x)

    h = z_ref[...]                                                 # bf16
    acc = jnp.dot(h, w0_ref[...], preferred_element_type=jnp.float32)
    h = leaky_relu(acc + b0_ref[...]).astype(jnp.bfloat16)
    for layer in range(2):                                         # static unroll
        acc = jnp.dot(h, w12_ref[layer], preferred_element_type=jnp.float32)
        h = leaky_relu(acc + b12_ref[layer]).astype(jnp.bfloat16)
    out = jnp.dot(h, w3_ref[...], preferred_element_type=jnp.float32)
    out_ref[...] = (out + b3_ref[...]).astype(out_ref.dtype)


def prepare_params(params):
    """Pad + pack the weights ONCE (call at init, reuse across forwards).

    Zero padding keeps padded lanes exactly 0 through every hidden layer
    because leaky_relu(0) == 0, so no masking is needed in the kernel.
    """
    (w0, b0), (w1, b1), (w2, b2), (w3, b3) = params
    z_dim, hidden = w0.shape
    out_dim = w3.shape[1]
    z_pad = _round_up(z_dim, 128)
    h_pad = _round_up(hidden, 128)
    out_pad = _round_up(out_dim, 128)

    def pad_w(w, r, c):
        return (jnp.zeros((r, c), jnp.bfloat16)
                .at[:w.shape[0], :w.shape[1]].set(w.astype(jnp.bfloat16)))

    def pad_b(b, c):
        return (jnp.zeros((1, c), jnp.float32)
                .at[:, :b.shape[1]].set(b.astype(jnp.float32)))

    return dict(
        z_dim=z_dim, hidden=hidden, out_dim=out_dim,
        z_pad=z_pad, h_pad=h_pad, out_pad=out_pad,
        w0=pad_w(w0, z_pad, h_pad), b0=pad_b(b0, h_pad),
        w12=jnp.stack([pad_w(w1, h_pad, h_pad), pad_w(w2, h_pad, h_pad)]),
        b12=jnp.stack([pad_b(b1, h_pad), pad_b(b2, h_pad)]),
        w3=pad_w(w3, h_pad, out_pad), b3=pad_b(b3, out_pad),
    )


def hyper_mapping_forward(z, packed, map_output_dim_freq,
                          out_dtype=jnp.float32):
    """Run the fused Pallas kernel on pre-packed params; slice & split output."""
    B = z.shape[0]
    z_dim, out_dim = packed["z_dim"], packed["out_dim"]
    Zp, Hp, Op = packed["z_pad"], packed["h_pad"], packed["out_pad"]

    # Batch tile: large tiles amortize the ~0.35us/step pipeline overhead on
    # v5e/v6e; bf16 sublane tile is (16, 128) so small B rounds to 16.
    if B >= 512:
        TB = 512
    elif B >= 256:
        TB = 256
    else:
        TB = _round_up(B, 16)
    B_pad = _round_up(B, TB)
    grid = (B_pad // TB,)

    z_p = (jnp.zeros((B_pad, Zp), jnp.bfloat16)
           .at[:B, :z_dim].set(z.astype(jnp.bfloat16)))

    # VMEM estimate: double-buffered batch tiles + single-buffered resident
    # weights/biases + in-flight f32 accumulator / bf16 activation temps.
    out_itemsize = jnp.dtype(out_dtype).itemsize
    vmem_est = (2 * (TB * Zp * 2 + TB * Op * out_itemsize)
                + (Zp * Hp + 2 * Hp * Hp + Hp * Op) * 2
                + (3 * Hp + Op) * 4
                + 3 * TB * Hp * 4)
    vmem_limit = int(min(64 << 20, max(16 << 20, 2 * vmem_est)))

    cost = pl.CostEstimate(
        flops=2 * B_pad * (Zp * Hp + 2 * Hp * Hp + Hp * Op),
        transcendentals=0,
        bytes_accessed=(z_p.size * 2
                        + (packed["w0"].size + packed["w12"].size
                           + packed["w3"].size) * 2
                        + (packed["b0"].size + packed["b12"].size
                           + packed["b3"].size) * 4
                        + B_pad * Op * out_itemsize),
    )

    def run(single_buffer_weights):
        kw = ({"pipeline_mode": pl.Buffered(1)}
              if single_buffer_weights else {})
        const2 = lambda i: (0, 0)
        const3 = lambda i: (0, 0, 0)
        return pl.pallas_call(
            _hyper_mapping_kernel,
            out_shape=jax.ShapeDtypeStruct((B_pad, Op), out_dtype),
            grid=grid,
            in_specs=[
                pl.BlockSpec((TB, Zp), lambda i: (i, 0)),
                pl.BlockSpec((Zp, Hp), const2, **kw),
                pl.BlockSpec((1, Hp), const2, **kw),
                pl.BlockSpec((2, Hp, Hp), const3, **kw),
                pl.BlockSpec((2, 1, Hp), const3, **kw),
                pl.BlockSpec((Hp, Op), const2, **kw),
                pl.BlockSpec((1, Op), const2, **kw),
            ],
            out_specs=pl.BlockSpec((TB, Op), lambda i: (i, 0)),
            compiler_params=pltpu.CompilerParams(
                dimension_semantics=("parallel",),
                vmem_limit_bytes=vmem_limit),
            cost_estimate=cost,
        )(z_p, packed["w0"], packed["b0"], packed["w12"], packed["b12"],
          packed["w3"], packed["b3"])

    try:
        out = run(single_buffer_weights=True)
    except Exception:
        # Fallback for JAX versions without BlockSpec pipeline_mode support;
        # default double-buffering of the constant-index weights is correct,
        # just uses 2x resident-weight VMEM.
        out = run(single_buffer_weights=False)

    out = out[:B, :out_dim]
    frequencies = out[..., :map_output_dim_freq]
    phase_shifts = out[..., map_output_dim_freq:]
    return frequencies, phase_shifts


def init_params(key, z_dim, map_hidden_dim, map_output_dim_freq,
                map_output_dim_phase):
    """Deterministic init matching the PyTorch module's __init__ semantics.

    Linear weights: kaiming_normal_(a=0.2, mode='fan_in',
    nonlinearity='leaky_relu'); biases: PyTorch Linear default
    U(-1/sqrt(fan_in), 1/sqrt(fan_in)); last-layer weight scaled by 0.25.
    Weights are stored transposed (in_dim, out_dim) for the kernel.
    """
    dims = [
        (z_dim, map_hidden_dim),
        (map_hidden_dim, map_hidden_dim),
        (map_hidden_dim, map_hidden_dim),
        (map_hidden_dim, map_output_dim_freq + map_output_dim_phase),
    ]
    a = 0.2
    gain = math.sqrt(2.0 / (1.0 + a * a))
    params = []
    for i, (fan_in, fan_out) in enumerate(dims):
        key, kw, kb = jax.random.split(key, 3)
        std = gain / math.sqrt(fan_in)
        w = std * jax.random.normal(kw, (fan_in, fan_out), dtype=jnp.float32)
        bound = 1.0 / math.sqrt(fan_in)
        b = jax.random.uniform(kb, (1, fan_out), dtype=jnp.float32,
                               minval=-bound, maxval=bound)
        if i == len(dims) - 1:
            w = w * 0.25
        params.append((w, b))
    return params


if __name__ == "__main__":
    # Small shapes consistent with the module.
    B = 8
    z_dim = 32
    map_hidden_dim = 32
    map_output_dim_freq = 24
    map_output_dim_phase = 24

    key = jax.random.PRNGKey(0)
    key, kz = jax.random.split(key)
    z = jax.random.normal(kz, (B, z_dim), dtype=jnp.float32)

    params = init_params(key, z_dim, map_hidden_dim,
                         map_output_dim_freq, map_output_dim_phase)

    # Pad/pack once (init time); reused by every forward call.
    packed = prepare_params(params)

    frequencies, phase_shifts = hyper_mapping_forward(
        z, packed, map_output_dim_freq)
    jax.block_until_ready((frequencies, phase_shifts))

    assert frequencies.shape == (B, map_output_dim_freq)
    assert phase_shifts.shape == (B, map_output_dim_phase)

    # Reference with the SAME bf16-operand / f32-accumulate math as the kernel
    # (tight check that the pallas path is correct).
    def ref_forward_bf16(z, params):
        h = z
        for i, (w, b) in enumerate(params):
            h = jnp.dot(h.astype(jnp.bfloat16), w.astype(jnp.bfloat16),
                        preferred_element_type=jnp.float32) + b
            if i < len(params) - 1:
                h = jnp.maximum(h, 0.2 * h)
        return h[..., :map_output_dim_freq], h[..., map_output_dim_freq:]

    rf, rp = ref_forward_bf16(z, params)
    assert jnp.allclose(frequencies, rf, atol=2e-3, rtol=2e-3)
    assert jnp.allclose(phase_shifts, rp, atol=2e-3, rtol=2e-3)

    # Coarse sanity check against the pure-f32 module semantics (bf16 MXU
    # operands introduce ~bf16-level deviation only).
    def ref_forward_f32(z, params):
        h = z
        for i, (w, b) in enumerate(params):
            h = h @ w + b
            if i < len(params) - 1:
                h = jnp.where(h >= 0, h, 0.2 * h)
        return h[..., :map_output_dim_freq], h[..., map_output_dim_freq:]

    rf32, rp32 = ref_forward_f32(z, params)
    assert jnp.allclose(frequencies, rf32, atol=0.1, rtol=0.1)
    assert jnp.allclose(phase_shifts, rp32, atol=0.1, rtol=0.1)

    print("KERNEL_OK")
</pallas_src>

<mosaic_0001>
module attributes {stable_mosaic.version = 11 : i64} {
  func.func @_hyper_mapping_kernel(%arg0: i32, %arg1: memref<16x128xbf16, #tpu.memory_space<vmem>>, %arg2: memref<128x128xbf16, #tpu.memory_space<vmem>>, %arg3: memref<1x128xf32, #tpu.memory_space<vmem>>, %arg4: memref<2x128x128xbf16, #tpu.memory_space<vmem>>, %arg5: memref<2x1x128xf32, #tpu.memory_space<vmem>>, %arg6: memref<128x128xbf16, #tpu.memory_space<vmem>>, %arg7: memref<1x128xf32, #tpu.memory_space<vmem>>, %arg8: memref<16x128xf32, #tpu.memory_space<vmem>>) attributes {dimension_semantics = [#tpu.dimension_semantics<parallel>], iteration_bounds = array<i64: 1>, scalar_prefetch = 0 : i64, scratch_operands = 0 : i64, tpu.core_type = #tpu.core_type<tc>, window_params = [{transform_indices = @transform_0, window_bounds = array<i64: 16, 128>}, {pipeline_mode = #tpu.pipeline_mode<synchronous>, transform_indices = @transform_1, window_bounds = array<i64: 128, 128>}, {pipeline_mode = #tpu.pipeline_mode<synchronous>, transform_indices = @transform_2, window_bounds = array<i64: 1, 128>}, {pipeline_mode = #tpu.pipeline_mode<synchronous>, transform_indices = @transform_3, window_bounds = array<i64: 2, 128, 128>}, {pipeline_mode = #tpu.pipeline_mode<synchronous>, transform_indices = @transform_4, window_bounds = array<i64: 2, 1, 128>}, {pipeline_mode = #tpu.pipeline_mode<synchronous>, transform_indices = @transform_5, window_bounds = array<i64: 128, 128>}, {pipeline_mode = #tpu.pipeline_mode<synchronous>, transform_indices = @transform_6, window_bounds = array<i64: 1, 128>}, {transform_indices = @transform_7, window_bounds = array<i64: 16, 128>}]} {
    %c0 = arith.constant 0 : index
    %c0_0 = arith.constant 0 : index
    %0 = vector.load %arg1[%c0, %c0_0] : memref<16x128xbf16, #tpu.memory_space<vmem>>, vector<16x128xbf16>
    %c0_1 = arith.constant 0 : index
    %c0_2 = arith.constant 0 : index
    %1 = vector.load %arg2[%c0_1, %c0_2] : memref<128x128xbf16, #tpu.memory_space<vmem>>, vector<128x128xbf16>
    %cst = arith.constant dense<0.000000e+00> : vector<16x128xf32>
    %2 = tpu.matmul %0, %1, %cst {dimension_numbers = #tpu.dot_dimension_numbers<[1], [0], [0], [1], [0, 0, 1, 1], [], []>} : vector<16x128xbf16>, vector<128x128xbf16>, vector<16x128xf32> -> vector<16x128xf32>
    %c0_3 = arith.constant 0 : index
    %c0_4 = arith.constant 0 : index
    %3 = vector.load %arg3[%c0_3, %c0_4] : memref<1x128xf32, #tpu.memory_space<vmem>>, vector<1x128xf32>
    %4 = vector.broadcast %3 : vector<1x128xf32> to vector<16x128xf32>
    %5 = arith.addf %2, %4 : vector<16x128xf32>
    %cst_5 = arith.constant 2.000000e-01 : f32
    %6 = vector.broadcast %cst_5 : f32 to vector<16x128xf32>
    %7 = arith.mulf %6, %5 : vector<16x128xf32>
    %8 = arith.maximumf %5, %7 : vector<16x128xf32>
    %9 = arith.truncf %8 : vector<16x128xf32> to vector<16x128xbf16>
    %c0_6 = arith.constant 0 : index
    %c0_7 = arith.constant 0 : index
    %c0_8 = arith.constant 0 : index
    %10 = vector.load %arg4[%c0_6, %c0_7, %c0_8] : memref<2x128x128xbf16, #tpu.memory_space<vmem>>, vector<1x128x128xbf16>
    %11 = vector.shape_cast %10 : vector<1x128x128xbf16> to vector<128x128xbf16>
    %cst_9 = arith.constant dense<0.000000e+00> : vector<16x128xf32>
    %12 = tpu.matmul %9, %11, %cst_9 {dimension_numbers = #tpu.dot_dimension_numbers<[1], [0], [0], [1], [0, 0, 1, 1], [], []>} : vector<16x128xbf16>, vector<128x128xbf16>, vector<16x128xf32> -> vector<16x128xf32>
    %c0_10 = arith.constant 0 : index
    %c0_11 = arith.constant 0 : index
    %c0_12 = arith.constant 0 : index
    %13 = vector.load %arg5[%c0_10, %c0_11, %c0_12] : memref<2x1x128xf32, #tpu.memory_space<vmem>>, vector<1x1x128xf32>
    %14 = vector.shape_cast %13 : vector<1x1x128xf32> to vector<1x128xf32>
    %15 = vector.broadcast %14 : vector<1x128xf32> to vector<16x128xf32>
    %16 = arith.addf %12, %15 : vector<16x128xf32>
    %cst_13 = arith.constant 2.000000e-01 : f32
    %17 = vector.broadcast %cst_13 : f32 to vector<16x128xf32>
    %18 = arith.mulf %17, %16 : vector<16x128xf32>
    %19 = arith.maximumf %16, %18 : vector<16x128xf32>
    %20 = arith.truncf %19 : vector<16x128xf32> to vector<16x128xbf16>
    %c1 = arith.constant 1 : index
    %c0_14 = arith.constant 0 : index
    %c0_15 = arith.constant 0 : index
    %21 = vector.load %arg4[%c1, %c0_14, %c0_15] : memref<2x128x128xbf16, #tpu.memory_space<vmem>>, vector<1x128x128xbf16>
    %22 = vector.shape_cast %21 : vector<1x128x128xbf16> to vector<128x128xbf16>
    %cst_16 = arith.constant dense<0.000000e+00> : vector<16x128xf32>
    %23 = tpu.matmul %20, %22, %cst_16 {dimension_numbers = #tpu.dot_dimension_numbers<[1], [0], [0], [1], [0, 0, 1, 1], [], []>} : vector<16x128xbf16>, vector<128x128xbf16>, vector<16x128xf32> -> vector<16x128xf32>
    %c1_17 = arith.constant 1 : index
    %c0_18 = arith.constant 0 : index
    %c0_19 = arith.constant 0 : index
    %24 = vector.load %arg5[%c1_17, %c0_18, %c0_19] : memref<2x1x128xf32, #tpu.memory_space<vmem>>, vector<1x1x128xf32>
    %25 = vector.shape_cast %24 : vector<1x1x128xf32> to vector<1x128xf32>
    %26 = vector.broadcast %25 : vector<1x128xf32> to vector<16x128xf32>
    %27 = arith.addf %23, %26 : vector<16x128xf32>
    %cst_20 = arith.constant 2.000000e-01 : f32
    %28 = vector.broadcast %cst_20 : f32 to vector<16x128xf32>
    %29 = arith.mulf %28, %27 : vector<16x128xf32>
    %30 = arith.maximumf %27, %29 : vector<16x128xf32>
    %31 = arith.truncf %30 : vector<16x128xf32> to vector<16x128xbf16>
    %c0_21 = arith.constant 0 : index
    %c0_22 = arith.constant 0 : index
    %32 = vector.load %arg6[%c0_21, %c0_22] : memref<128x128xbf16, #tpu.memory_space<vmem>>, vector<128x128xbf16>
    %cst_23 = arith.constant dense<0.000000e+00> : vector<16x128xf32>
    %33 = tpu.matmul %31, %32, %cst_23 {dimension_numbers = #tpu.dot_dimension_numbers<[1], [0], [0], [1], [0, 0, 1, 1], [], []>} : vector<16x128xbf16>, vector<128x128xbf16>, vector<16x128xf32> -> vector<16x128xf32>
    %c0_24 = arith.constant 0 : index
    %c0_25 = arith.constant 0 : index
    %34 = vector.load %arg7[%c0_24, %c0_25] : memref<1x128xf32, #tpu.memory_space<vmem>>, vector<1x128xf32>
    %35 = vector.broadcast %34 : vector<1x128xf32> to vector<16x128xf32>
    %36 = arith.addf %33, %35 : vector<16x128xf32>
    %c0_26 = arith.constant 0 : index
    %c0_27 = arith.constant 0 : index
    %37 = vector.load %arg8[%c0_26, %c0_27] : memref<16x128xf32, #tpu.memory_space<vmem>>, vector<16x128xf32>
    tpu.vector_store %arg8[%c0_26, %c0_27], %36 {strides = array<i32>} : memref<16x128xf32, #tpu.memory_space<vmem>>, vector<16x128xf32>,
    return
  }
  func.func @transform_0(%arg0: i32) -> (i32, i32) {
    %c0_i32 = arith.constant 0 : i32
    %c0_i32_0 = arith.constant 0 : i32
    return %arg0, %c0_i32 : i32, i32
  }
  func.func @transform_1(%arg0: i32) -> (i32, i32) {
    %c0_i32 = arith.constant 0 : i32
    %c0_i32_0 = arith.constant 0 : i32
    %c0_i32_1 = arith.constant 0 : i32
    return %c0_i32, %c0_i32_0 : i32, i32
  }
  func.func @transform_2(%arg0: i32) -> (i32, i32) {
    %c0_i32 = arith.constant 0 : i32
    %c0_i32_0 = arith.constant 0 : i32
    %c0_i32_1 = arith.constant 0 : i32
    return %c0_i32, %c0_i32_0 : i32, i32
  }
  func.func @transform_3(%arg0: i32) -> (i32, i32, i32) {
    %c0_i32 = arith.constant 0 : i32
    %c0_i32_0 = arith.constant 0 : i32
    %c0_i32_1 = arith.constant 0 : i32
    %c0_i32_2 = arith.constant 0 : i32
    return %c0_i32, %c0_i32_0, %c0_i32_1 : i32, i32, i32
  }
  func.func @transform_4(%arg0: i32) -> (i32, i32, i32) {
    %c0_i32 = arith.constant 0 : i32
    %c0_i32_0 = arith.constant 0 : i32
    %c0_i32_1 = arith.constant 0 : i32
    %c0_i32_2 = arith.constant 0 : i32
    return %c0_i32, %c0_i32_0, %c0_i32_1 : i32, i32, i32
  }
  func.func @transform_5(%arg0: i32) -> (i32, i32) {
    %c0_i32 = arith.constant 0 : i32
    %c0_i32_0 = arith.constant 0 : i32
    %c0_i32_1 = arith.constant 0 : i32
    return %c0_i32, %c0_i32_0 : i32, i32
  }
  func.func @transform_6(%arg0: i32) -> (i32, i32) {
    %c0_i32 = arith.constant 0 : i32
    %c0_i32_0 = arith.constant 0 : i32
    %c0_i32_1 = arith.constant 0 : i32
    return %c0_i32, %c0_i32_0 : i32, i32
  }
  func.func @transform_7(%arg0: i32) -> (i32, i32) {
    %c0_i32 = arith.constant 0 : i32
    %c0_i32_0 = arith.constant 0 : i32
    return %arg0, %c0_i32 : i32, i32
  }
}

module attributes {stable_mosaic.version = 11 : i64} {
  func.func @_hyper_mapping_kernel(%arg0: i32, %arg1: memref<16x128xbf16, #tpu.memory_space<vmem>>, %arg2: memref<128x128xbf16, #tpu.memory_space<vmem>>, %arg3: memref<1x128xf32, #tpu.memory_space<vmem>>, %arg4: memref<2x128x128xbf16, #tpu.memory_space<vmem>>, %arg5: memref<2x1x128xf32, #tpu.memory_space<vmem>>, %arg6: memref<128x128xbf16, #tpu.memory_space<vmem>>, %arg7: memref<1x128xf32, #tpu.memory_space<vmem>>, %arg8: memref<16x128xf32, #tpu.memory_space<vmem>>) attributes {dimension_semantics = [#tpu.dimension_semantics<parallel>], iteration_bounds = array<i64: 1>, scalar_prefetch = 0 : i64, scratch_operands = 0 : i64, tpu.core_type = #tpu.core_type<tc>, window_params = [{transform_indices = @transform_0, window_bounds = array<i64: 16, 128>}, {pipeline_mode = #tpu.pipeline_mode<synchronous>, transform_indices = @transform_1, window_bounds = array<i64: 128, 128>}, {pipeline_mode = #tpu.pipeline_mode<synchronous>, transform_indices = @transform_2, window_bounds = array<i64: 1, 128>}, {pipeline_mode = #tpu.pipeline_mode<synchronous>, transform_indices = @transform_3, window_bounds = array<i64: 2, 128, 128>}, {pipeline_mode = #tpu.pipeline_mode<synchronous>, transform_indices = @transform_4, window_bounds = array<i64: 2, 1, 128>}, {pipeline_mode = #tpu.pipeline_mode<synchronous>, transform_indices = @transform_5, window_bounds = array<i64: 128, 128>}, {pipeline_mode = #tpu.pipeline_mode<synchronous>, transform_indices = @transform_6, window_bounds = array<i64: 1, 128>}, {transform_indices = @transform_7, window_bounds = array<i64: 16, 128>}]} {
    %c0 = arith.constant 0 : index
    %c0_0 = arith.constant 0 : index
    %0 = vector.load %arg1[%c0, %c0_0] : memref<16x128xbf16, #tpu.memory_space<vmem>>, vector<16x128xbf16>
    %c0_1 = arith.constant 0 : index
    %c0_2 = arith.constant 0 : index
    %1 = vector.load %arg2[%c0_1, %c0_2] : memref<128x128xbf16, #tpu.memory_space<vmem>>, vector<128x128xbf16>
    %cst = arith.constant dense<0.000000e+00> : vector<16x128xf32>
    %2 = tpu.matmul %0, %1, %cst {dimension_numbers = #tpu.dot_dimension_numbers<[1], [0], [0], [1], [0, 0, 1, 1], [], []>} : vector<16x128xbf16>, vector<128x128xbf16>, vector<16x128xf32> -> vector<16x128xf32>
    %c0_3 = arith.constant 0 : index
    %c0_4 = arith.constant 0 : index
    %3 = vector.load %arg3[%c0_3, %c0_4] : memref<1x128xf32, #tpu.memory_space<vmem>>, vector<1x128xf32>
    %4 = vector.broadcast %3 : vector<1x128xf32> to vector<16x128xf32>
    %5 = arith.addf %2, %4 : vector<16x128xf32>
    %cst_5 = arith.constant 2.000000e-01 : f32
    %6 = vector.broadcast %cst_5 : f32 to vector<16x128xf32>
    %7 = arith.mulf %6, %5 : vector<16x128xf32>
    %8 = arith.maximumf %5, %7 : vector<16x128xf32>
    %9 = arith.truncf %8 : vector<16x128xf32> to vector<16x128xbf16>
    %c0_6 = arith.constant 0 : index
    %c0_7 = arith.constant 0 : index
    %c0_8 = arith.constant 0 : index
    %10 = vector.load %arg4[%c0_6, %c0_7, %c0_8] : memref<2x128x128xbf16, #tpu.memory_space<vmem>>, vector<1x128x128xbf16>
    %11 = vector.shape_cast %10 : vector<1x128x128xbf16> to vector<128x128xbf16>
    %cst_9 = arith.constant dense<0.000000e+00> : vector<16x128xf32>
    %12 = tpu.matmul %9, %11, %cst_9 {dimension_numbers = #tpu.dot_dimension_numbers<[1], [0], [0], [1], [0, 0, 1, 1], [], []>} : vector<16x128xbf16>, vector<128x128xbf16>, vector<16x128xf32> -> vector<16x128xf32>
    %c0_10 = arith.constant 0 : index
    %c0_11 = arith.constant 0 : index
    %c0_12 = arith.constant 0 : index
    %13 = vector.load %arg5[%c0_10, %c0_11, %c0_12] : memref<2x1x128xf32, #tpu.memory_space<vmem>>, vector<1x1x128xf32>
    %14 = vector.shape_cast %13 : vector<1x1x128xf32> to vector<1x128xf32>
    %15 = vector.broadcast %14 : vector<1x128xf32> to vector<16x128xf32>
    %16 = arith.addf %12, %15 : vector<16x128xf32>
    %cst_13 = arith.constant 2.000000e-01 : f32
    %17 = vector.broadcast %cst_13 : f32 to vector<16x128xf32>
    %18 = arith.mulf %17, %16 : vector<16x128xf32>
    %19 = arith.maximumf %16, %18 : vector<16x128xf32>
    %20 = arith.truncf %19 : vector<16x128xf32> to vector<16x128xbf16>
    %c1 = arith.constant 1 : index
    %c0_14 = arith.constant 0 : index
    %c0_15 = arith.constant 0 : index
    %21 = vector.load %arg4[%c1, %c0_14, %c0_15] : memref<2x128x128xbf16, #tpu.memory_space<vmem>>, vector<1x128x128xbf16>
    %22 = vector.shape_cast %21 : vector<1x128x128xbf16> to vector<128x128xbf16>
    %cst_16 = arith.constant dense<0.000000e+00> : vector<16x128xf32>
    %23 = tpu.matmul %20, %22, %cst_16 {dimension_numbers = #tpu.dot_dimension_numbers<[1], [0], [0], [1], [0, 0, 1, 1], [], []>} : vector<16x128xbf16>, vector<128x128xbf16>, vector<16x128xf32> -> vector<16x128xf32>
    %c1_17 = arith.constant 1 : index
    %c0_18 = arith.constant 0 : index
    %c0_19 = arith.constant 0 : index
    %24 = vector.load %arg5[%c1_17, %c0_18, %c0_19] : memref<2x1x128xf32, #tpu.memory_space<vmem>>, vector<1x1x128xf32>
    %25 = vector.shape_cast %24 : vector<1x1x128xf32> to vector<1x128xf32>
    %26 = vector.broadcast %25 : vector<1x128xf32> to vector<16x128xf32>
    %27 = arith.addf %23, %26 : vector<16x128xf32>
    %cst_20 = arith.constant 2.000000e-01 : f32
    %28 = vector.broadcast %cst_20 : f32 to vector<16x128xf32>
    %29 = arith.mulf %28, %27 : vector<16x128xf32>
    %30 = arith.maximumf %27, %29 : vector<16x128xf32>
    %31 = arith.truncf %30 : vector<16x128xf32> to vector<16x128xbf16>
    %c0_21 = arith.constant 0 : index
    %c0_22 = arith.constant 0 : index
    %32 = vector.load %arg6[%c0_21, %c0_22] : memref<128x128xbf16, #tpu.memory_space<vmem>>, vector<128x128xbf16>
    %cst_23 = arith.constant dense<0.000000e+00> : vector<16x128xf32>
    %33 = tpu.matmul %31, %32, %cst_23 {dimension_numbers = #tpu.dot_dimension_numbers<[1], [0], [0], [1], [0, 0, 1, 1], [], []>} : vector<16x128xbf16>, vector<128x128xbf16>, vector<16x128xf32> -> vector<16x128xf32>
    %c0_24 = arith.constant 0 : index
    %c0_25 = arith.constant 0 : index
    %34 = vector.load %arg7[%c0_24, %c0_25] : memref<1x128xf32, #tpu.memory_space<vmem>>, vector<1x128xf32>
    %35 = vector.broadcast %34 : vector<1x128xf32> to vector<16x128xf32>
    %36 = arith.addf %33, %35 : vector<16x128xf32>
    %c0_26 = arith.constant 0 : index
    %c0_27 = arith.constant 0 : index
    %37 = vector.load %arg8[%c0_26, %c0_27] : memref<16x128xf32, #tpu.memory_space<vmem>>, vector<16x128xf32>
    tpu.vector_store %arg8[%c0_26, %c0_27], %36 {strides = array<i32>} : memref<16x128xf32, #tpu.memory_space<vmem>>, vector<16x128xf32>,
    return
  }
  func.func @transform_0(%arg0: i32) -> (i32, i32) {
    %c0_i32 = arith.constant 0 : i32
    %c0_i32_0 = arith.constant 0 : i32
    return %arg0, %c0_i32 : i32, i32
  }
  func.func @transform_1(%arg0: i32) -> (i32, i32) {
    %c0_i32 = arith.constant 0 : i32
    %c0_i32_0 = arith.constant 0 : i32
    %c0_i32_1 = arith.constant 0 : i32
    return %c0_i32, %c0_i32_0 : i32, i32
  }
  func.func @transform_2(%arg0: i32) -> (i32, i32) {
    %c0_i32 = arith.constant 0 : i32
    %c0_i32_0 = arith.constant 0 : i32
    %c0_i32_1 = arith.constant 0 : i32
    return %c0_i32, %c0_i32_0 : i32, i32
  }
  func.func @transform_3(%arg0: i32) -> (i32, i32, i32) {
    %c0_i32 = arith.constant 0 : i32
    %c0_i32_0 = arith.constant 0 : i32
    %c0_i32_1 = arith.constant 0 : i32
    %c0_i32_2 = arith.constant 0 : i32
    return %c0_i32, %c0_i32_0, %c0_i32_1 : i32, i32, i32
  }
  func.func @transform_4(%arg0: i32) -> (i32, i32, i32) {
    %c0_i32 = arith.constant 0 : i32
    %c0_i32_0 = arith.constant 0 : i32
    %c0_i32_1 = arith.constant 0 : i32
    %c0_i32_2 = arith.constant 0 : i32
    return %c0_i32, %c0_i32_0, %c0_i32_1 : i32, i32, i32
  }
  func.func @transform_5(%arg0: i32) -> (i32, i32) {
    %c0_i32 = arith.constant 0 : i32
    %c0_i32_0 = arith.constant 0 : i32
    %c0_i32_1 = arith.constant 0 : i32
    return %c0_i32, %c0_i32_0 : i32, i32
  }
  func.func @transform_6(%arg0: i32) -> (i32, i32) {
    %c0_i32 = arith.constant 0 : i32
    %c0_i32_0 = arith.constant 0 : i32
    %c0_i32_1 = arith.constant 0 : i32
    return %c0_i32, %c0_i32_0 : i32, i32
  }
  func.func @transform_7(%arg0: i32) -> (i32, i32) {
    %c0_i32 = arith.constant 0 : i32
    %c0_i32_0 = arith.constant 0 : i32
    return %arg0, %c0_i32 : i32, i32
  }
}

</mosaic_0001>

<bundles_post_ra>
// kernel: tpu_custom_call.1
= control target key start
LH: loop header
LB: loop body
LE: loop exit
PB: predicated region body
PF: predicated region fallthrough
CT: control target
= control target key end

     0   :  { %12 = vsyncpa [#allocation3], 0  ;;  %s849_s0 = inlined_call_operand.hbm [shape: bf16[16,128], index: 0, kind: input, shape index: {}]   ;;  %s850_s1 = inlined_call_operand.hbm [shape: bf16[128,128], index: 1, kind: input, shape index: {}]   ;;  %s851_s2 = inlined_call_operand.vmem [shape: f32[1,128], index: 2, kind: input, shape index: {}]   ;;  %s852_s3 = inlined_call_operand.hbm [shape: bf16[2,128,128], index: 3, kind: input, shape index: {}]   ;;  %s853_s4 = inlined_call_operand.vmem [shape: f32[2,1,128], index: 4, kind: input, shape index: {}]   ;;  %s854_s5 = inlined_call_operand.hbm [shape: bf16[128,128], index: 5, kind: input, shape index: {}]   ;;  %s855_s6 = inlined_call_operand.vmem [shape: f32[1,128], index: 6, kind: input, shape index: {}]   ;;  %s856_s7 = inlined_call_operand.hbm [shape: f32[16,128], index: 7, kind: output, shape index: {}]  }
   0x1   :  { %13 = vsyncpa [#allocation6], 0 }
   0x2   :  { %14 = vsyncpa [#allocation9], 0 }
   0x3   :  { %15 = vsyncpa [#allocation4], 0  ;;  %s33_s26 = sshll.u32 %s850_s1, 4  ;;  %s773_s27 = smov [#allocation5]   ;;  %s34_s26 = int_to_ptr.hbm [resolvable:$true] %s33_s26 }
   0x4   :  { %s35_s28 = sshll.u32 %s773_s27, 4  ;;  %s20_s8 = sshll.u32 %s849_s0, 4  ;;  %s36_s28 = int_to_ptr.vmem [resolvable:$true] %s35_s28  ;;  %s21_s8 = int_to_ptr.hbm [resolvable:$true] %s20_s8 }
   0x5   :  { %s774_s9 = smov 64   ;;  %s775_s10 = smov 4  }
   0x6   :  { %41 = dma.hbm_to_vmem [thread:$0]  %s34_s26, 1024, %s36_s28, [#allocation6], %s774_s9, %s774_s9, %s775_s10  }
   0x7   :  { %s776_s11 = smov [#allocation2]   ;;  %s48_s15 = sshll.u32 %s852_s3, 4  ;;  %s49_s15 = int_to_ptr.hbm [resolvable:$true] %s48_s15 }
   0x8   :  { %s22_s12 = sshll.u32 %s776_s11, 4  ;;  %s63_s17 = sshll.u32 %s854_s5, 4  ;;  %s23_s12 = int_to_ptr.vmem [resolvable:$true] %s22_s12  ;;  %s64_s17 = int_to_ptr.hbm [resolvable:$true] %s63_s17 }
   0x9   :  { %28 = dma.hbm_to_vmem [thread:$0]  %s21_s8, 128, %s23_s12, [#allocation3], %s774_s9, %s774_s9, %s775_s10  }
   0xa   :  { %s777_s18 = smov [#allocation7]   ;;  %s778_s0 = smov [#allocation8]  }
   0xb   :  { %s50_s19 = sshll.u32 %s777_s18, 4  ;;  %s65_s20 = sshll.u32 %s778_s0, 4  ;;  %s51_s19 = int_to_ptr.vmem [resolvable:$true] %s50_s19  ;;  %s66_s20 = int_to_ptr.vmem [resolvable:$true] %s65_s20 }
   0xc   :  { %56 = dma.hbm_to_vmem [thread:$0]  %s49_s15, 2048, %s51_s19, [#allocation6], %s774_s9, %s774_s9, %s775_s10  }
   0xd   :  { %71 = dma.hbm_to_vmem [thread:$0]  %s64_s17, 1024, %s66_s20, [#allocation9], %s774_s9, %s774_s9, %s775_s10  }
   0xe   :  { %765 = dma.done.wait [#allocation3], 128  }
   0xf   :  { %766 = vsyncadd [#allocation3], 4294967168 }
  0x10   :  { %767 = dma.done.wait [#allocation6], 3072  }
  0x11   :  { %768 = vsyncadd [#allocation6], 4294964224 }
  0x12   :  { %769 = dma.done.wait [#allocation9], 1024  }
  0x13   :  { %770 = vsyncadd [#allocation9], 4294966272  ;;  %v607_v0 = vld [vmem:[#allocation5 + $0x38] sm:$0xff]  ;;  %v606_v1 = vld [vmem:[#allocation5 + $0x30] sm:$0xff]  ;;  %s779_s26 = smov [#allocation10]   ;;  %s451_s29 = sshll.u32 %s856_s7, 4  ;;  %s452_s29 = int_to_ptr.hbm [resolvable:$true] %s451_s29 }
  0x14   :  { %166 = vmatpush.bf16.msra.mxu0 %v607_v0  ;;  %v615_v2 = vld [vmem:[#allocation7 + $0x38] sm:$0xff]  ;;  %v614_v3 = vld [vmem:[#allocation7 + $0x30] sm:$0xff]  ;;  %v605_v4 = vld [vmem:[#allocation5 + $0x28] sm:$0xff]  ;;  %s449_s27 = sshll.u32 %s779_s26, 4  ;;  %s780_s30 = smov 128   ;;  %s450_s27 = int_to_ptr.vmem [resolvable:$true] %s449_s27 }
  0x15   :  { %253 = vmatpush.bf16.msra.mxu1 %v615_v2  ;;  %v613_v5 = vld [vmem:[#allocation7 + $0x28] sm:$0xff]  ;;  %v604_v6 = vld [vmem:[#allocation5 + $0x20] sm:$0xff]  ;;  %v603_v8 = vld [vmem:[#allocation5 + $0x18] sm:$0xff]  ;;  %s781_s8 = smov 8  }
  0x16   :  { %v612_v7 = vld [vmem:[#allocation7 + $0x20] sm:$0xff]  ;;  %v602_v9 = vld [vmem:[#allocation5 + $0x10] sm:$0xff]  ;;  %v601_v10 = vld [vmem:[#allocation5 + $0x8] sm:$0xff] }
  0x17   :  { %v600_v11 = vld [vmem:[#allocation5] sm:$0xff]  ;;  %v599_v12 = vld [vmem:[#allocation2] sm:$0xff]  ;;  %v610_v14 = vld [vmem:[#allocation7 + $0x10] sm:$0xff] }
  0x18   :  { %167 = vmatpush.bf16.msra.mxu0 %v606_v1  ;;  %v611_v13 = vld [vmem:[#allocation7 + $0x18] sm:$0xff]  ;;  %v609_v15 = vld [vmem:[#allocation7 + $0x8] sm:$0xff]  ;;  %v608_v16 = vld [vmem:[#allocation7] sm:$0xff] }
  0x19   :  { %254 = vmatpush.bf16.msra.mxu1 %v614_v3  ;;  %v623_v17 = vld [vmem:[#allocation7 + $0x78] sm:$0xff]  ;;  %v622_v18 = vld [vmem:[#allocation7 + $0x70] sm:$0xff]  ;;  %v621_v19 = vld [vmem:[#allocation7 + $0x68] sm:$0xff] }
  0x1a   :  { %342 = vmatpush.bf16.msra.mxu2 %v623_v17  ;;  %v620_v20 = vld [vmem:[#allocation7 + $0x60] sm:$0xff]  ;;  %v641_v22 = vld [vmem:[%s851_s2] ss:$0 sm:$0xff]  ;;  %v618_v32 = vld [vmem:[#allocation7 + $0x50] sm:$0xff] }
  0x1b   :  { %v619_v31 = vld [vmem:[#allocation7 + $0x58] sm:$0xff]  ;;  %v617_v33 = vld [vmem:[#allocation7 + $0x48] sm:$0xff]  ;;  %v616_v34 = vld [vmem:[#allocation7 + $0x40] sm:$0xff] }
  0x1c   :  { %168 = vmatpush.bf16.msra.mxu0 %v605_v4  ;;  %v631_v35 = vld [vmem:[#allocation8 + $0x38] sm:$0xff]  ;;  %v630_v36 = vld [vmem:[#allocation8 + $0x30] sm:$0xff]  ;;  %v629_v37 = vld [vmem:[#allocation8 + $0x28] sm:$0xff] }
  0x1d   :  { %255 = vmatpush.bf16.msra.mxu1 %v613_v5  ;;  %429 = vmatpush.bf16.msra.mxu3 %v631_v35  ;;  %v628_v38 = vld [vmem:[#allocation8 + $0x20] sm:$0xff]  ;;  %v642_v40 = vld [vmem:[%s853_s4] ss:$0 sm:$0xff]  ;;  %v626_v50 = vld [vmem:[#allocation8 + $0x10] sm:$0xff] }
  0x1e   :  { %343 = vmatpush.bf16.msra.mxu2 %v622_v18  ;;  %v627_v49 = vld [vmem:[#allocation8 + $0x18] sm:$0xff]  ;;  %v625_v51 = vld [vmem:[#allocation8 + $0x8] sm:$0xff]  ;;  %v624_v52 = vld [vmem:[#allocation8] sm:$0xff] }
  0x1f   :  { %v643_v54 = vld [vmem:[%s853_s4 + $0x1] ss:$0 sm:$0xff]  ;;  %v644_v63 = vld [vmem:[%s855_s6] ss:$0 sm:$0xff] }
  0x20   :  { %169 = vmatpush.bf16.msra.mxu0 %v604_v6 }
  0x21   :  { %256 = vmatpush.bf16.msra.mxu1 %v612_v7  ;;  %430 = vmatpush.bf16.msra.mxu3 %v630_v36 }
  0x22   :  { %344 = vmatpush.bf16.msra.mxu2 %v621_v19 }
  0x24   :  { %170 = vmatpush.bf16.msra.mxu0 %v603_v8 }
  0x25   :  { %257 = vmatpush.bf16.msra.mxu1 %v611_v13  ;;  %431 = vmatpush.bf16.msra.mxu3 %v629_v37 }
  0x26   :  { %345 = vmatpush.bf16.msra.mxu2 %v620_v20 }
  0x28   :  { %171 = vmatpush.bf16.msra.mxu0 %v602_v9 }
  0x29   :  { %258 = vmatpush.bf16.msra.mxu1 %v610_v14  ;;  %432 = vmatpush.bf16.msra.mxu3 %v628_v38 }
  0x2a   :  { %346 = vmatpush.bf16.msra.mxu2 %v619_v31 }
  0x2c   :  { %172 = vmatpush.bf16.msra.mxu0 %v601_v10 }
  0x2d   :  { %259 = vmatpush.bf16.msra.mxu1 %v609_v15  ;;  %433 = vmatpush.bf16.msra.mxu3 %v627_v49 }
  0x2e   :  { %347 = vmatpush.bf16.msra.mxu2 %v618_v32 }
  0x30   :  { %173 = vmatpush.bf16.msra.mxu0 %v600_v11 }
  0x31   :  { %260 = vmatpush.bf16.msra.mxu1 %v608_v16  ;;  %434 = vmatpush.bf16.msra.mxu3 %v626_v50 }
  0x32   :  { %348 = vmatpush.bf16.msra.mxu2 %v617_v33 }
  0x33   :  { %174 = vmatmul.bf16.vlgmr.msra.gmra.mxu0 %v599_v12 }
  0x35   :  { %435 = vmatpush.bf16.msra.mxu3 %v625_v51 }
  0x36   :  { %349 = vmatpush.bf16.msra.mxu2 %v616_v34 }
  0x39   :  { %436 = vmatpush.bf16.msra.mxu3 %v624_v52 }
  0xb0   :  { %v175_v21 = vpop.f32.mrf.mxu0 }
  0xb1   :  { %v176_v23 = vadd.f32 %v641_v22, %v175_v21 }
  0xb3   :  { %v180_v25 = vmul.f32 0.2, %v176_v23 }
  0xb5   :  { %v182_v28 = vmax.f32 %v176_v23, %v180_v25 }
  0xb8   :  { %v177_v24 = vpop.f32.mrf.mxu0 }
  0xb9   :  { %v178_v26 = vadd.f32 %v641_v22, %v177_v24 }
  0xbb   :  { %v181_v27 = vmul.f32 0.2, %v178_v26 }
  0xbd   :  { %v183_v29 = vmax.f32 %v178_v26, %v181_v27 }
  0xbf   :  { %v184_v30 = vpack.c.bf16 %v183_v29, %v182_v28 }
  0xc1   :  { %261 = vmatmul.bf16.vlgmr.msra.gmra.mxu1 %v184_v30 }
 0x13e   :  { %v262_v39 = vpop.f32.mrf.mxu1 }
 0x13f   :  { %v263_v41 = vadd.f32 %v642_v40, %v262_v39 }
 0x141   :  { %v267_v43 = vmul.f32 0.2, %v263_v41 }
 0x143   :  { %v269_v46 = vmax.f32 %v263_v41, %v267_v43 }
 0x146   :  { %v264_v42 = vpop.f32.mrf.mxu1 }
 0x147   :  { %v265_v44 = vadd.f32 %v642_v40, %v264_v42 }
 0x149   :  { %v268_v45 = vmul.f32 0.2, %v265_v44 }
 0x14b   :  { %v270_v47 = vmax.f32 %v265_v44, %v268_v45 }
 0x14d   :  { %v271_v48 = vpack.c.bf16 %v270_v47, %v269_v46 }
 0x14f   :  { %350 = vmatmul.bf16.vlgmr.msra.gmra.mxu2 %v271_v48 }
 0x1d2   :  { %v351_v53 = vpop.f32.mrf.mxu2 }
 0x1d3   :  { %v352_v55 = vadd.f32 %v643_v54, %v351_v53 }
 0x1d5   :  { %v356_v57 = vmul.f32 0.2, %v352_v55 }
 0x1d7   :  { %v358_v60 = vmax.f32 %v352_v55, %v356_v57 }
 0x1da   :  { %v353_v56 = vpop.f32.mrf.mxu2 }
 0x1db   :  { %v354_v58 = vadd.f32 %v643_v54, %v353_v56 }
 0x1dd   :  { %v357_v59 = vmul.f32 0.2, %v354_v58 }
 0x1df   :  { %v359_v61 = vmax.f32 %v354_v58, %v357_v59 }
 0x1e1   :  { %v360_v62 = vpack.c.bf16 %v359_v61, %v358_v60 }
 0x1e3   :  { %437 = vmatmul.bf16.vlgmr.msra.gmra.mxu3 %v360_v62 }
 0x266   :  { %v438_v0 = vpop.f32.mrf.mxu3 }
 0x267   :  { %v439_v1 = vadd.f32 %v644_v63, %v438_v0 }
 0x269   :  { %443 = vst [vmem:[#allocation10] sm:$0xff] %v439_v1 }
 0x26e   :  { %v440_v2 = vpop.f32.mrf.mxu3 }
 0x26f   :  { %v441_v3 = vadd.f32 %v644_v63, %v440_v2 }
 0x271   :  { %444 = vst [vmem:[#allocation10 + $0x8] sm:$0xff] %v441_v3 }
 0x272   :  { %457 = dma.vmem_to_hbm [thread:$0]  %s450_s27, 256, %s452_s29, [#allocation4], %s780_s30, %s780_s30, %s781_s8  }
 0x273   :  { %771 = dma.done.wait [#allocation4], 256  }
 0x274   :  { %772 = vsyncadd [#allocation4], 4294967040 }
 0x275   :  { %462 = vsyncpa [#allocation3], 1 }
 0x276   :  { %463 = vsyncpa [#allocation6], 1 }
 0x277   :  { %464 = vsyncpa [#allocation9], 1 }
 0x278   :  { %465 = vsyncpa [#allocation4], 1 }

// kernel: tpu_custom_call.1
= control target key start
LH: loop header
LB: loop body
LE: loop exit
PB: predicated region body
PF: predicated region fallthrough
CT: control target
= control target key end

     0   :  { %12 = vsyncpa [#allocation3], 0  ;;  %s849_s0 = inlined_call_operand.hbm [shape: bf16[16,128], index: 0, kind: input, shape index: {}]   ;;  %s850_s1 = inlined_call_operand.hbm [shape: bf16[128,128], index: 1, kind: input, shape index: {}]   ;;  %s851_s2 = inlined_call_operand.vmem [shape: f32[1,128], index: 2, kind: input, shape index: {}]   ;;  %s852_s3 = inlined_call_operand.hbm [shape: bf16[2,128,128], index: 3, kind: input, shape index: {}]   ;;  %s853_s4 = inlined_call_operand.vmem [shape: f32[2,1,128], index: 4, kind: input, shape index: {}]   ;;  %s854_s5 = inlined_call_operand.hbm [shape: bf16[128,128], index: 5, kind: input, shape index: {}]   ;;  %s855_s6 = inlined_call_operand.vmem [shape: f32[1,128], index: 6, kind: input, shape index: {}]   ;;  %s856_s7 = inlined_call_operand.hbm [shape: f32[16,128], index: 7, kind: output, shape index: {}]  }
   0x1   :  { %13 = vsyncpa [#allocation6], 0 }
   0x2   :  { %14 = vsyncpa [#allocation9], 0 }
   0x3   :  { %15 = vsyncpa [#allocation4], 0  ;;  %s33_s26 = sshll.u32 %s850_s1, 4  ;;  %s773_s27 = smov [#allocation5]   ;;  %s34_s26 = int_to_ptr.hbm [resolvable:$true] %s33_s26 }
   0x4   :  { %s35_s28 = sshll.u32 %s773_s27, 4  ;;  %s20_s8 = sshll.u32 %s849_s0, 4  ;;  %s36_s28 = int_to_ptr.vmem [resolvable:$true] %s35_s28  ;;  %s21_s8 = int_to_ptr.hbm [resolvable:$true] %s20_s8 }
   0x5   :  { %s774_s9 = smov 64   ;;  %s775_s10 = smov 4  }
   0x6   :  { %41 = dma.hbm_to_vmem [thread:$0]  %s34_s26, 1024, %s36_s28, [#allocation6], %s774_s9, %s774_s9, %s775_s10  }
   0x7   :  { %s776_s11 = smov [#allocation2]   ;;  %s48_s15 = sshll.u32 %s852_s3, 4  ;;  %s49_s15 = int_to_ptr.hbm [resolvable:$true] %s48_s15 }
   0x8   :  { %s22_s12 = sshll.u32 %s776_s11, 4  ;;  %s63_s17 = sshll.u32 %s854_s5, 4  ;;  %s23_s12 = int_to_ptr.vmem [resolvable:$true] %s22_s12  ;;  %s64_s17 = int_to_ptr.hbm [resolvable:$true] %s63_s17 }
   0x9   :  { %28 = dma.hbm_to_vmem [thread:$0]  %s21_s8, 128, %s23_s12, [#allocation3], %s774_s9, %s774_s9, %s775_s10  }
   0xa   :  { %s777_s18 = smov [#allocation7]   ;;  %s778_s0 = smov [#allocation8]  }
   0xb   :  { %s50_s19 = sshll.u32 %s777_s18, 4  ;;  %s65_s20 = sshll.u32 %s778_s0, 4  ;;  %s51_s19 = int_to_ptr.vmem [resolvable:$true] %s50_s19  ;;  %s66_s20 = int_to_ptr.vmem [resolvable:$true] %s65_s20 }
   0xc   :  { %56 = dma.hbm_to_vmem [thread:$0]  %s49_s15, 2048, %s51_s19, [#allocation6], %s774_s9, %s774_s9, %s775_s10  }
   0xd   :  { %71 = dma.hbm_to_vmem [thread:$0]  %s64_s17, 1024, %s66_s20, [#allocation9], %s774_s9, %s774_s9, %s775_s10  }
   0xe   :  { %765 = dma.done.wait [#allocation3], 128  }
   0xf   :  { %766 = vsyncadd [#allocation3], 4294967168 }
  0x10   :  { %767 = dma.done.wait [#allocation6], 3072  }
  0x11   :  { %768 = vsyncadd [#allocation6], 4294964224 }
  0x12   :  { %769 = dma.done.wait [#allocation9], 1024  }
  0x13   :  { %770 = vsyncadd [#allocation9], 4294966272  ;;  %v607_v0 = vld [vmem:[#allocation5 + $0x38] sm:$0xff]  ;;  %v606_v1 = vld [vmem:[#allocation5 + $0x30] sm:$0xff]  ;;  %s779_s26 = smov [#allocation10]   ;;  %s451_s29 = sshll.u32 %s856_s7, 4  ;;  %s452_s29 = int_to_ptr.hbm [resolvable:$true] %s451_s29 }
  0x14   :  { %166 = vmatpush.bf16.msra.mxu0 %v607_v0  ;;  %v615_v2 = vld [vmem:[#allocation7 + $0x38] sm:$0xff]  ;;  %v614_v3 = vld [vmem:[#allocation7 + $0x30] sm:$0xff]  ;;  %v605_v4 = vld [vmem:[#allocation5 + $0x28] sm:$0xff]  ;;  %s449_s27 = sshll.u32 %s779_s26, 4  ;;  %s780_s30 = smov 128   ;;  %s450_s27 = int_to_ptr.vmem [resolvable:$true] %s449_s27 }
  0x15   :  { %253 = vmatpush.bf16.msra.mxu1 %v615_v2  ;;  %v613_v5 = vld [vmem:[#allocation7 + $0x28] sm:$0xff]  ;;  %v604_v6 = vld [vmem:[#allocation5 + $0x20] sm:$0xff]  ;;  %v603_v8 = vld [vmem:[#allocation5 + $0x18] sm:$0xff]  ;;  %s781_s8 = smov 8  }
  0x16   :  { %v612_v7 = vld [vmem:[#allocation7 + $0x20] sm:$0xff]  ;;  %v602_v9 = vld [vmem:[#allocation5 + $0x10] sm:$0xff]  ;;  %v601_v10 = vld [vmem:[#allocation5 + $0x8] sm:$0xff] }
  0x17   :  { %v600_v11 = vld [vmem:[#allocation5] sm:$0xff]  ;;  %v599_v12 = vld [vmem:[#allocation2] sm:$0xff]  ;;  %v610_v14 = vld [vmem:[#allocation7 + $0x10] sm:$0xff] }
  0x18   :  { %167 = vmatpush.bf16.msra.mxu0 %v606_v1  ;;  %v611_v13 = vld [vmem:[#allocation7 + $0x18] sm:$0xff]  ;;  %v609_v15 = vld [vmem:[#allocation7 + $0x8] sm:$0xff]  ;;  %v608_v16 = vld [vmem:[#allocation7] sm:$0xff] }
  0x19   :  { %254 = vmatpush.bf16.msra.mxu1 %v614_v3  ;;  %v623_v17 = vld [vmem:[#allocation7 + $0x78] sm:$0xff]  ;;  %v622_v18 = vld [vmem:[#allocation7 + $0x70] sm:$0xff]  ;;  %v621_v19 = vld [vmem:[#allocation7 + $0x68] sm:$0xff] }
  0x1a   :  { %342 = vmatpush.bf16.msra.mxu2 %v623_v17  ;;  %v620_v20 = vld [vmem:[#allocation7 + $0x60] sm:$0xff]  ;;  %v641_v22 = vld [vmem:[%s851_s2] ss:$0 sm:$0xff]  ;;  %v618_v32 = vld [vmem:[#allocation7 + $0x50] sm:$0xff] }
  0x1b   :  { %v619_v31 = vld [vmem:[#allocation7 + $0x58] sm:$0xff]  ;;  %v617_v33 = vld [vmem:[#allocation7 + $0x48] sm:$0xff]  ;;  %v616_v34 = vld [vmem:[#allocation7 + $0x40] sm:$0xff] }
  0x1c   :  { %168 = vmatpush.bf16.msra.mxu0 %v605_v4  ;;  %v631_v35 = vld [vmem:[#allocation8 + $0x38] sm:$0xff]  ;;  %v630_v36 = vld [vmem:[#allocation8 + $0x30] sm:$0xff]  ;;  %v629_v37 = vld [vmem:[#allocation8 + $0x28] sm:$0xff] }
  0x1d   :  { %255 = vmatpush.bf16.msra.mxu1 %v613_v5  ;;  %429 = vmatpush.bf16.msra.mxu3 %v631_v35  ;;  %v628_v38 = vld [vmem:[#allocation8 + $0x20] sm:$0xff]  ;;  %v642_v40 = vld [vmem:[%s853_s4] ss:$0 sm:$0xff]  ;;  %v626_v50 = vld [vmem:[#allocation8 + $0x10] sm:$0xff] }
  0x1e   :  { %343 = vmatpush.bf16.msra.mxu2 %v622_v18  ;;  %v627_v49 = vld [vmem:[#allocation8 + $0x18] sm:$0xff]  ;;  %v625_v51 = vld [vmem:[#allocation8 + $0x8] sm:$0xff]  ;;  %v624_v52 = vld [vmem:[#allocation8] sm:$0xff] }
  0x1f   :  { %v643_v54 = vld [vmem:[%s853_s4 + $0x1] ss:$0 sm:$0xff]  ;;  %v644_v63 = vld [vmem:[%s855_s6] ss:$0 sm:$0xff] }
  0x20   :  { %169 = vmatpush.bf16.msra.mxu0 %v604_v6 }
  0x21   :  { %256 = vmatpush.bf16.msra.mxu1 %v612_v7  ;;  %430 = vmatpush.bf16.msra.mxu3 %v630_v36 }
  0x22   :  { %344 = vmatpush.bf16.msra.mxu2 %v621_v19 }
  0x24   :  { %170 = vmatpush.bf16.msra.mxu0 %v603_v8 }
  0x25   :  { %257 = vmatpush.bf16.msra.mxu1 %v611_v13  ;;  %431 = vmatpush.bf16.msra.mxu3 %v629_v37 }
  0x26   :  { %345 = vmatpush.bf16.msra.mxu2 %v620_v20 }
  0x28   :  { %171 = vmatpush.bf16.msra.mxu0 %v602_v9 }
  0x29   :  { %258 = vmatpush.bf16.msra.mxu1 %v610_v14  ;;  %432 = vmatpush.bf16.msra.mxu3 %v628_v38 }
  0x2a   :  { %346 = vmatpush.bf16.msra.mxu2 %v619_v31 }
  0x2c   :  { %172 = vmatpush.bf16.msra.mxu0 %v601_v10 }
  0x2d   :  { %259 = vmatpush.bf16.msra.mxu1 %v609_v15  ;;  %433 = vmatpush.bf16.msra.mxu3 %v627_v49 }
  0x2e   :  { %347 = vmatpush.bf16.msra.mxu2 %v618_v32 }
  0x30   :  { %173 = vmatpush.bf16.msra.mxu0 %v600_v11 }
  0x31   :  { %260 = vmatpush.bf16.msra.mxu1 %v608_v16  ;;  %434 = vmatpush.bf16.msra.mxu3 %v626_v50 }
  0x32   :  { %348 = vmatpush.bf16.msra.mxu2 %v617_v33 }
  0x33   :  { %174 = vmatmul.bf16.vlgmr.msra.gmra.mxu0 %v599_v12 }
  0x35   :  { %435 = vmatpush.bf16.msra.mxu3 %v625_v51 }
  0x36   :  { %349 = vmatpush.bf16.msra.mxu2 %v616_v34 }
  0x39   :  { %436 = vmatpush.bf16.msra.mxu3 %v624_v52 }
  0xb0   :  { %v175_v21 = vpop.f32.mrf.mxu0 }
  0xb1   :  { %v176_v23 = vadd.f32 %v641_v22, %v175_v21 }
  0xb3   :  { %v180_v25 = vmul.f32 0.2, %v176_v23 }
  0xb5   :  { %v182_v28 = vmax.f32 %v176_v23, %v180_v25 }
  0xb8   :  { %v177_v24 = vpop.f32.mrf.mxu0 }
  0xb9   :  { %v178_v26 = vadd.f32 %v641_v22, %v177_v24 }
  0xbb   :  { %v181_v27 = vmul.f32 0.2, %v178_v26 }
  0xbd   :  { %v183_v29 = vmax.f32 %v178_v26, %v181_v27 }
  0xbf   :  { %v184_v30 = vpack.c.bf16 %v183_v29, %v182_v28 }
  0xc1   :  { %261 = vmatmul.bf16.vlgmr.msra.gmra.mxu1 %v184_v30 }
 0x13e   :  { %v262_v39 = vpop.f32.mrf.mxu1 }
 0x13f   :  { %v263_v41 = vadd.f32 %v642_v40, %v262_v39 }
 0x141   :  { %v267_v43 = vmul.f32 0.2, %v263_v41 }
 0x143   :  { %v269_v46 = vmax.f32 %v263_v41, %v267_v43 }
 0x146   :  { %v264_v42 = vpop.f32.mrf.mxu1 }
 0x147   :  { %v265_v44 = vadd.f32 %v642_v40, %v264_v42 }
 0x149   :  { %v268_v45 = vmul.f32 0.2, %v265_v44 }
 0x14b   :  { %v270_v47 = vmax.f32 %v265_v44, %v268_v45 }
 0x14d   :  { %v271_v48 = vpack.c.bf16 %v270_v47, %v269_v46 }
 0x14f   :  { %350 = vmatmul.bf16.vlgmr.msra.gmra.mxu2 %v271_v48 }
 0x1d2   :  { %v351_v53 = vpop.f32.mrf.mxu2 }
 0x1d3   :  { %v352_v55 = vadd.f32 %v643_v54, %v351_v53 }
 0x1d5   :  { %v356_v57 = vmul.f32 0.2, %v352_v55 }
 0x1d7   :  { %v358_v60 = vmax.f32 %v352_v55, %v356_v57 }
 0x1da   :  { %v353_v56 = vpop.f32.mrf.mxu2 }
 0x1db   :  { %v354_v58 = vadd.f32 %v643_v54, %v353_v56 }
 0x1dd   :  { %v357_v59 = vmul.f32 0.2, %v354_v58 }
 0x1df   :  { %v359_v61 = vmax.f32 %v354_v58, %v357_v59 }
 0x1e1   :  { %v360_v62 = vpack.c.bf16 %v359_v61, %v358_v60 }
 0x1e3   :  { %437 = vmatmul.bf16.vlgmr.msra.gmra.mxu3 %v360_v62 }
 0x266   :  { %v438_v0 = vpop.f32.mrf.mxu3 }
 0x267   :  { %v439_v1 = vadd.f32 %v644_v63, %v438_v0 }
 0x269   :  { %443 = vst [vmem:[#allocation10] sm:$0xff] %v439_v1 }
 0x26e   :  { %v440_v2 = vpop.f32.mrf.mxu3 }
 0x26f   :  { %v441_v3 = vadd.f32 %v644_v63, %v440_v2 }
 0x271   :  { %444 = vst [vmem:[#allocation10 + $0x8] sm:$0xff] %v441_v3 }
 0x272   :  { %457 = dma.vmem_to_hbm [thread:$0]  %s450_s27, 256, %s452_s29, [#allocation4], %s780_s30, %s780_s30, %s781_s8  }
 0x273   :  { %771 = dma.done.wait [#allocation4], 256  }
 0x274   :  { %772 = vsyncadd [#allocation4], 4294967040 }
 0x275   :  { %462 = vsyncpa [#allocation3], 1 }
 0x276   :  { %463 = vsyncpa [#allocation6], 1 }
 0x277   :  { %464 = vsyncpa [#allocation9], 1 }
 0x278   :  { %465 = vsyncpa [#allocation4], 1 }

</bundles_post_ra>
